<compile_context>
chip_gen: v7x
topology: tpu7x:2x2x1
jax: 0.10.0
libtpu: 0.0.40
codegen_flags: <defaults>
</compile_context>

<pallas_src>
import functools

import jax
import jax.numpy as jnp
from jax import lax
from jax.experimental import pallas as pl
from jax.experimental.pallas import tpu as pltpu


_SUBLANE = 8
_LANE = 128
_MAX_ROWS_T = 32768    # row cap per tile, transposed (small-C) layout
_MAX_ROWS_R = 8192     # row cap per tile, row-major (large-C) layout


def _cdiv(a, b):
    return -(-a // b)


def _round_up(x, n):
    return _cdiv(x, n) * n


# --------------------------------------------------------------------------
# VMEM budgeting (generation aware, padded-layout accounting)
# --------------------------------------------------------------------------

def _vmem_capacity_bytes():
    try:
        return int(pltpu.get_tpu_info().vmem_capacity_bytes)
    except Exception:                      # pragma: no cover - be conservative
        return 64 * 1024 * 1024            # v7x per-TensorCore VMEM


def _vmem_limit_target():
    """vmem_limit_bytes to request: ~3/4 of physical VMEM per core
    (48 MiB on v7x's 64 MiB, 96 MiB on v5e/v6e's 128 MiB), never below the
    scoped defaults so v5e's 16 MiB default is not the binding limit."""
    cap = _vmem_capacity_bytes()
    return int(max(32 * 1024 * 1024, min((3 * cap) // 4, 96 * 1024 * 1024)))


def _per_row_vmem_t(c, logit_bytes, rowloss):
    """Per-row VMEM bytes, transposed (C, T) layout: the sublane axis pads C
    to 8; double-buffered logits/labels(/loss) blocks plus f32 temporaries."""
    c_pad = _round_up(c, _SUBLANE)
    stream = c_pad * logit_bytes + _SUBLANE * 4
    if rowloss:
        stream += _SUBLANE * 4
    temps = 4 * c_pad * 4 + 8 * _SUBLANE * 4
    return 2 * stream + temps


def _per_row_vmem_r(c, logit_bytes, rowloss):
    """Per-row VMEM bytes, row-major (T, C) layout: the lane axis pads C to a
    multiple of 128 and every (T, 1) column block pads to 512 B/row."""
    c_pad = _round_up(c, _LANE)
    stream = c_pad * logit_bytes + _LANE * 4
    if rowloss:
        stream += _LANE * 4
    temps = 4 * c_pad * 4 + 8 * _LANE * 4
    return 2 * stream + temps


def _select_tile_rows(m, per_row_bytes, multiple, max_rows):
    """Largest row tile that fits the VMEM budget, rounded to `multiple`
    (128 when rows live on the lane axis, 8 when on the sublane axis)."""
    budget = _vmem_limit_target() - 8 * 1024 * 1024
    cap = min(max(multiple, budget // per_row_bytes), max_rows)
    if m <= cap:
        return m     # single tile: full-extent block needs no alignment
    return max(multiple, (cap // multiple) * multiple)


# --------------------------------------------------------------------------
# Per-tile math
# --------------------------------------------------------------------------

def _focal_pow(one_m, gamma):
    if gamma == 0:
        return jnp.ones_like(one_m)
    if isinstance(gamma, int):
        if gamma == 1:
            return one_m
        if gamma == 2:
            return one_m * one_m          # lowers to one VPU multiply
        return lax.integer_pow(one_m, gamma)
    return one_m ** gamma


def _row_losses_t(logits, labels, alpha_col, col_start, num_rows, gamma,
                  ignore_index, alpha_scalar):
    """Transposed layout: logits (C, T), labels (1, T), alpha_col (C, 1)."""
    logits = logits.astype(jnp.float32)
    c, t = logits.shape
    col_ids = lax.broadcasted_iota(jnp.int32, (1, t), 1) + col_start
    valid = jnp.logical_and(labels != ignore_index, col_ids < num_rows)
    safe_labels = jnp.where(valid, labels, 0)
    class_ids = lax.broadcasted_iota(jnp.int32, (c, t), 0)
    is_lbl = class_ids == safe_labels                     # (C, T)

    # log p_t via log-sum-exp over the (small, sublane-resident) class axis.
    mx = jnp.max(logits, axis=0, keepdims=True)
    shifted = logits - mx
    lse = jnp.log(jnp.sum(jnp.exp(shifted), axis=0, keepdims=True))
    z_t = jnp.sum(jnp.where(is_lbl, shifted, 0.0), axis=0, keepdims=True)
    logp = z_t - lse                                      # (1, T)
    p_t = jnp.exp(logp)

    if alpha_scalar is not None:
        # Scalar-alpha fast path: alpha if label==0 else 1-alpha; no alpha
        # input stream and no (C, T) select + cross-sublane reduce.
        alpha_t = jnp.where(safe_labels == 0, jnp.float32(alpha_scalar),
                            jnp.float32(1.0 - alpha_scalar))
    else:
        alpha_t = jnp.sum(jnp.where(is_lbl, alpha_col.astype(jnp.float32), 0.0),
                          axis=0, keepdims=True)

    focal = _focal_pow(1.0 - p_t, gamma)
    loss = jnp.where(valid, -alpha_t * focal * logp, 0.0)  # (1, T)
    return loss, valid


def _row_losses_r(logits, labels, alpha_row, row_start, num_rows, gamma,
                  ignore_index, alpha_scalar):
    """Row-major layout: logits (T, C), labels (T, 1), alpha_row (1, C)."""
    logits = logits.astype(jnp.float32)
    tm, c = logits.shape
    row_ids = lax.broadcasted_iota(jnp.int32, (tm, 1), 0) + row_start
    valid = jnp.logical_and(labels != ignore_index, row_ids < num_rows)
    safe_labels = jnp.where(valid, labels, 0)
    class_ids = lax.broadcasted_iota(jnp.int32, (tm, c), 1)
    is_lbl = class_ids == safe_labels

    mx = jnp.max(logits, axis=-1, keepdims=True)
    shifted = logits - mx
    lse = jnp.log(jnp.sum(jnp.exp(shifted), axis=-1, keepdims=True))
    z_t = jnp.sum(jnp.where(is_lbl, shifted, 0.0), axis=-1, keepdims=True)
    logp = z_t - lse
    p_t = jnp.exp(logp)

    if alpha_scalar is not None:
        alpha_t = jnp.where(safe_labels == 0, jnp.float32(alpha_scalar),
                            jnp.float32(1.0 - alpha_scalar))
    else:
        alpha_t = jnp.sum(jnp.where(is_lbl, alpha_row.astype(jnp.float32), 0.0),
                          axis=-1, keepdims=True)

    focal = _focal_pow(1.0 - p_t, gamma)
    loss = jnp.where(valid, -alpha_t * focal * logp, 0.0)  # (T, 1)
    return loss, valid


# --------------------------------------------------------------------------
# Kernels (shared between both layouts)
# --------------------------------------------------------------------------

def _reduce_kernel(*refs, row_loss_fn, gamma, ignore_index, num_rows,
                   tile_rows, alpha_scalar):
    if alpha_scalar is None:
        (logits_ref, labels_ref, alpha_ref,
         sums_ref, cnts_ref, acc_ref, cnt_ref) = refs
        alpha = alpha_ref[...]
    else:
        (logits_ref, labels_ref,
         sums_ref, cnts_ref, acc_ref, cnt_ref) = refs
        alpha = None

    @pl.when(pl.program_id(1) == 0)
    def _init():
        acc_ref[...] = jnp.zeros_like(acc_ref)
        cnt_ref[...] = jnp.zeros_like(cnt_ref)

    tile_id = pl.program_id(0) * pl.num_programs(1) + pl.program_id(1)
    loss, valid = row_loss_fn(logits_ref[...], labels_ref[...], alpha,
                              tile_id * tile_rows, num_rows, gamma,
                              ignore_index, alpha_scalar)
    # Vector accumulators (pure VPU adds): no per-step cross-lane reduce or
    # scalar read-modify-write.  Count is int32 -> exact for any row count.
    acc_ref[...] += loss
    cnt_ref[...] += valid.astype(jnp.int32)

    @pl.when(pl.program_id(1) == pl.num_programs(1) - 1)
    def _finalize():
        sums_ref[...] = jnp.full(sums_ref.shape, jnp.sum(acc_ref[...]),
                                 jnp.float32)
        cnts_ref[...] = jnp.full(cnts_ref.shape, jnp.sum(cnt_ref[...]),
                                 jnp.int32)


def _rowloss_kernel(*refs, row_loss_fn, gamma, ignore_index, num_rows,
                    tile_rows, alpha_scalar):
    if alpha_scalar is None:
        logits_ref, labels_ref, alpha_ref, out_ref = refs
        alpha = alpha_ref[...]
    else:
        logits_ref, labels_ref, out_ref = refs
        alpha = None
    start = pl.program_id(0) * tile_rows
    loss, _ = row_loss_fn(logits_ref[...], labels_ref[...], alpha, start,
                          num_rows, gamma, ignore_index, alpha_scalar)
    out_ref[...] = loss            # already in the output block's layout


# --------------------------------------------------------------------------
# Wrapper
# --------------------------------------------------------------------------

def focal_loss(y_pred, y_true, *, num_classes, alpha=0.5, gamma=2,
               reduction="mean", ignore_index=-100,
               transposed_class_limit=64, max_rows_per_tile=None):
    """Pallas-TPU forward pass matching FocalLoss.forward."""
    if reduction not in ("none", "mean", "sum"):
        raise ValueError(
            f"{reduction} is not allow, only permit `none` `mean` and `sum`.")

    c = y_pred.shape[-1]
    assert c == num_classes

    # ---- parameter setup (mirrors FocalLoss.__init__) ----
    alpha_scalar = None
    alpha_vec = None
    if isinstance(alpha, (list, tuple)):
        assert len(alpha) == num_classes
        alpha_vec = jnp.asarray(alpha, jnp.float32)
    else:
        assert alpha < 1
        alpha_scalar = float(alpha)

    logits = y_pred.reshape(-1, c)
    labels = y_true.reshape(-1).astype(jnp.int32)
    m = logits.shape[0]
    logit_bytes = logits.dtype.itemsize
    rowloss = reduction == "none"
    vmem_limit = _vmem_limit_target()

    use_t = c <= transposed_class_limit
    if use_t:
        # Classes on sublanes, rows on lanes (small / medium class counts).
        per_row = _per_row_vmem_t(c, logit_bytes, rowloss)
        tile = _select_tile_rows(m, per_row, _LANE,
                                 max_rows_per_tile or _MAX_ROWS_T)
        row_loss_fn = _row_losses_t
        # TODO(synk): a packed layout (floor(128/C) rows per lane row) would
        # avoid this extra HBM transpose pass entirely.
        logits_in, labels_in = logits.T, labels.reshape(1, m)
        alpha_in = None if alpha_scalar is not None else alpha_vec.reshape(c, 1)
        logits_block, labels_block = (c, tile), (1, tile)
        none_shape, none_block = (1, m), (1, tile)
        acc_block = (1, tile)
        to_block = lambda t: (0, t)
        finish_none = lambda o: o
    else:
        # Rows on sublanes, classes on lanes (large class counts).
        # TODO(synk): for very large C (>= ~16K) add a class-axis grid
        # dimension with an online LSE accumulator instead of full-C rows.
        per_row = _per_row_vmem_r(c, logit_bytes, rowloss)
        tile = _select_tile_rows(m, per_row, _SUBLANE,
                                 max_rows_per_tile or _MAX_ROWS_R)
        row_loss_fn = _row_losses_r
        logits_in, labels_in = logits, labels.reshape(m, 1)
        alpha_in = None if alpha_scalar is not None else alpha_vec.reshape(1, c)
        logits_block, labels_block = (tile, c), (tile, 1)
        none_shape, none_block = (m, 1), (tile, 1)
        acc_block = (tile, 1)
        to_block = lambda t: (t, 0)
        finish_none = lambda o: o.reshape(1, m)

    num_tiles = _cdiv(m, tile)
    args = [logits_in, labels_in] + ([] if alpha_in is None else [alpha_in])
    kw = dict(row_loss_fn=row_loss_fn, gamma=gamma, ignore_index=ignore_index,
              num_rows=m, tile_rows=tile, alpha_scalar=alpha_scalar)

    if rowloss:
        # Per-row losses written straight into a (1, M) / (M, 1) output; the
        # ragged tail block is clipped by Pallas (no post-kernel slice pass).
        in_specs = [pl.BlockSpec(logits_block, to_block),
                    pl.BlockSpec(labels_block, to_block)]
        if alpha_in is not None:
            in_specs.append(pl.BlockSpec(alpha_in.shape, lambda i: (0, 0)))
        out = pl.pallas_call(
            functools.partial(_rowloss_kernel, **kw),
            out_shape=jax.ShapeDtypeStruct(none_shape, jnp.float32),
            grid_spec=pltpu.PrefetchScalarGridSpec(
                num_scalar_prefetch=0,
                grid=(num_tiles,),
                in_specs=in_specs,
                out_specs=pl.BlockSpec(none_block, to_block)),
            compiler_params=pltpu.CompilerParams(
                dimension_semantics=("parallel",),
                vmem_limit_bytes=vmem_limit),
        )(*args)
        return finish_none(out)

    # mean / sum: only tiny per-core (sum, count) partials go back to HBM.
    n_cores = 2 if num_tiles >= 2 else 1
    inner = _cdiv(num_tiles, n_cores)
    last = num_tiles - 1

    def data_map(p, i):
        # Clamp so an out-of-range tile (odd tile count split across 2 cores)
        # re-reads the last tile; its rows are masked in-kernel.
        return to_block(jnp.minimum(p * inner + i, last))

    in_specs = [pl.BlockSpec(logits_block, data_map),
                pl.BlockSpec(labels_block, data_map)]
    if alpha_in is not None:
        in_specs.append(pl.BlockSpec(alpha_in.shape, lambda p, i: (0, 0)))
    # TODO(synk): pipeline_mode=pl.Buffered(3) on the logits spec could help
    # the large-C HBM-bound regime on v5e.
    sums, cnts = pl.pallas_call(
        functools.partial(_reduce_kernel, **kw),
        out_shape=(jax.ShapeDtypeStruct((n_cores, 1, _LANE), jnp.float32),
                   jax.ShapeDtypeStruct((n_cores, 1, _LANE), jnp.int32)),
        grid_spec=pltpu.PrefetchScalarGridSpec(
            num_scalar_prefetch=0,
            grid=(n_cores, inner),
            in_specs=in_specs,
            out_specs=(pl.BlockSpec((1, 1, _LANE), lambda p, i: (p, 0, 0)),
                       pl.BlockSpec((1, 1, _LANE), lambda p, i: (p, 0, 0))),
            scratch_shapes=[pltpu.VMEM(acc_block, jnp.float32),
                            pltpu.VMEM(acc_block, jnp.int32)]),
        compiler_params=pltpu.CompilerParams(
            dimension_semantics=("parallel", "arbitrary"),
            vmem_limit_bytes=vmem_limit),
    )(*args)

    loss_sum = jnp.sum(sums[:, 0, 0])
    if reduction == "sum":
        return loss_sum
    # 0/0 -> NaN when every label is ignore_index (matches torch 0/0).
    return loss_sum / jnp.sum(cnts[:, 0, 0]).astype(jnp.float32)


# --------------------------------------------------------------------------
# Pure-JAX reference and self-test
# --------------------------------------------------------------------------

def _ref_focal_loss(y_pred, y_true, *, num_classes, alpha=0.5, gamma=2,
                    reduction="mean", ignore_index=-100):
    if isinstance(alpha, (list, tuple)):
        alpha_vec = jnp.asarray(alpha, jnp.float32)
    else:
        alpha_vec = jnp.concatenate(
            [jnp.array([alpha], jnp.float32),
             jnp.full((num_classes - 1,), 1.0 - alpha, jnp.float32)])
    logits = y_pred.reshape(-1, y_pred.shape[-1]).astype(jnp.float32)
    labels = y_true.reshape(-1)
    valid = labels != ignore_index
    safe = jnp.where(valid, labels, 0)
    logprobs = jax.nn.log_softmax(logits, axis=1)
    logp = jnp.take_along_axis(logprobs, safe[:, None], axis=1)[:, 0]
    logp = jnp.where(valid, logp, 0.0)
    p_t = jnp.exp(logp)
    a_t = alpha_vec[safe]
    loss = -a_t * (1.0 - p_t) ** gamma * logp
    loss = jnp.where(valid, loss, 0.0)
    if reduction == "none":
        return loss.reshape(1, -1)
    if reduction == "mean":
        return loss.sum() / valid.sum()
    return loss.sum()


if __name__ == "__main__":
    key = jax.random.PRNGKey(0)
    k1, k2, k3, k4 = jax.random.split(key, 4)

    # Small case: y_pred [B, N, C], y_true [B, N], scalar alpha, single tile.
    B, N, C = 2, 8, 4
    y_pred = jax.random.normal(k1, (B, N, C), dtype=jnp.float32)
    y_true = jax.random.randint(k2, (B, N), 0, C, dtype=jnp.int32)
    for red in ("mean", "sum", "none"):
        got = jax.block_until_ready(
            focal_loss(y_pred, y_true, num_classes=C, alpha=0.5, gamma=2,
                       reduction=red))
        want = _ref_focal_loss(y_pred, y_true, num_classes=C, alpha=0.5,
                               gamma=2, reduction=red)
        assert got.shape == want.shape, (red, got.shape, want.shape)
        assert jnp.allclose(got, want, rtol=1e-5, atol=1e-6), (red, got, want)

    # Larger ragged case with ignore_index rows and list alpha; exercise both
    # layouts, multi-tile grids, the 2-core reduce split with a clamped tail
    # tile, and the clipped partial output block on the 'none' path.
    B2, N2, C2 = 2, 300, 5
    y_pred2 = jax.random.normal(k3, (B2, N2, C2), dtype=jnp.float32)
    y_true2 = jax.random.randint(k4, (B2, N2), 0, C2, dtype=jnp.int32)
    y_true2 = y_true2.at[0, ::7].set(-100)
    alpha_list = [0.1, 0.2, 0.3, 0.25, 0.15]

    for red in ("mean", "sum", "none"):
        want = _ref_focal_loss(y_pred2, y_true2, num_classes=C2,
                               alpha=alpha_list, gamma=2, reduction=red)
        # Transposed (small-C) layout, single tile.
        got = jax.block_until_ready(
            focal_loss(y_pred2, y_true2, num_classes=C2, alpha=alpha_list,
                       gamma=2, reduction=red))
        assert got.shape == want.shape
        assert jnp.allclose(got, want, rtol=1e-5, atol=1e-5), (red, got, want)
        # Transposed layout, forced multi-tile (5 tiles of 128 over 600 rows).
        got = jax.block_until_ready(
            focal_loss(y_pred2, y_true2, num_classes=C2, alpha=alpha_list,
                       gamma=2, reduction=red, max_rows_per_tile=128))
        assert jnp.allclose(got, want, rtol=1e-5, atol=1e-5), (red, got, want)
        # Row-major (large-C) layout, forced multi-tile.
        got = jax.block_until_ready(
            focal_loss(y_pred2, y_true2, num_classes=C2, alpha=alpha_list,
                       gamma=2, reduction=red, transposed_class_limit=0,
                       max_rows_per_tile=64))
        assert got.shape == want.shape
        assert jnp.allclose(got, want, rtol=1e-5, atol=1e-5), (red, got, want)

    print("KERNEL_OK")
</pallas_src>

<mosaic_0001>
module attributes {stable_mosaic.version = 11 : i64} {
  func.func @_reduce_kernel(%arg0: i32, %arg1: i32, %arg2: memref<4x16xf32, #tpu.memory_space<vmem>>, %arg3: memref<1x16xi32, #tpu.memory_space<vmem>>, %arg4: memref<1x1x128xf32, #tpu.memory_space<vmem>>, %arg5: memref<1x1x128xi32, #tpu.memory_space<vmem>>, %arg6: memref<1x16xf32, #tpu.memory_space<vmem>>, %arg7: memref<1x16xi32, #tpu.memory_space<vmem>>) attributes {dimension_semantics = [#tpu.dimension_semantics<parallel>, #tpu.dimension_semantics<arbitrary>], iteration_bounds = array<i64: 1, 1>, scalar_prefetch = 0 : i64, scratch_operands = 2 : i64, tpu.core_type = #tpu.core_type<tc>, window_params = [{transform_indices = @transform_0, window_bounds = array<i64: 4, 16>}, {transform_indices = @transform_1, window_bounds = array<i64: 1, 16>}, {transform_indices = @transform_2, window_bounds = array<i64: 1, 1, 128>}, {transform_indices = @transform_3, window_bounds = array<i64: 1, 1, 128>}]} {
    %c0_i32 = arith.constant 0 : i32
    %0 = arith.cmpi eq, %arg1, %c0_i32 : i32
    %1 = arith.extui %0 : i1 to i32
    %c0_i32_0 = arith.constant 0 : i32
    %2 = arith.cmpi ne, %1, %c0_i32_0 : i32
    scf.if %2 {
      %cst_25 = arith.constant 0.000000e+00 : f32
      %59 = vector.broadcast %cst_25 : f32 to vector<1x16xf32>
      %c0_26 = arith.constant 0 : index
      %c0_27 = arith.constant 0 : index
      %60 = vector.load %arg6[%c0_26, %c0_27] : memref<1x16xf32, #tpu.memory_space<vmem>>, vector<1x16xf32>
      tpu.vector_store %arg6[%c0_26, %c0_27], %59 {strides = array<i32>} : memref<1x16xf32, #tpu.memory_space<vmem>>, vector<1x16xf32>,
      %c0_i32_28 = arith.constant 0 : i32
      %61 = vector.broadcast %c0_i32_28 : i32 to vector<1x16xi32>
      %c0_29 = arith.constant 0 : index
      %c0_30 = arith.constant 0 : index
      %62 = vector.load %arg7[%c0_29, %c0_30] : memref<1x16xi32, #tpu.memory_space<vmem>>, vector<1x16xi32>
      tpu.vector_store %arg7[%c0_29, %c0_30], %61 {strides = array<i32>} : memref<1x16xi32, #tpu.memory_space<vmem>>, vector<1x16xi32>,
    } else {
    }
    %c1_i32 = arith.constant 1 : i32
    %3 = arith.muli %arg0, %c1_i32 : i32
    %4 = arith.addi %3, %arg1 : i32
    %c0 = arith.constant 0 : index
    %c0_1 = arith.constant 0 : index
    %5 = vector.load %arg2[%c0, %c0_1] : memref<4x16xf32, #tpu.memory_space<vmem>>, vector<4x16xf32>
    %c0_2 = arith.constant 0 : index
    %c0_3 = arith.constant 0 : index
    %6 = vector.load %arg3[%c0_2, %c0_3] : memref<1x16xi32, #tpu.memory_space<vmem>>, vector<1x16xi32>
    %c16_i32 = arith.constant 16 : i32
    %7 = arith.muli %4, %c16_i32 : i32
    %8 = tpu.iota {dimensions = array<i32: 1>} : vector<1x16xi32>
    %9 = vector.broadcast %7 : i32 to vector<1x16xi32>
    %10 = arith.addi %8, %9 : vector<1x16xi32>
    %c-100_i32 = arith.constant -100 : i32
    %11 = vector.broadcast %c-100_i32 : i32 to vector<1x16xi32>
    %12 = arith.cmpi ne, %6, %11 : vector<1x16xi32>
    %c16_i32_4 = arith.constant 16 : i32
    %13 = vector.broadcast %c16_i32_4 : i32 to vector<1x16xi32>
    %14 = arith.cmpi slt, %10, %13 : vector<1x16xi32>
    %15 = arith.andi %12, %14 : vector<1x16xi1>
    %c0_i32_5 = arith.constant 0 : i32
    %16 = vector.broadcast %c0_i32_5 : i32 to vector<1x16xi32>
    %17 = arith.select %15, %6, %16 : vector<1x16xi1>, vector<1x16xi32>
    %18 = tpu.iota {dimensions = array<i32: 0>} : vector<4x16xi32>
    %19 = vector.broadcast %17 : vector<1x16xi32> to vector<4x16xi32>
    %20 = arith.cmpi eq, %18, %19 : vector<4x16xi32>
    %cst = arith.constant dense<0xFF800000> : vector<16xf32>
    %21 = vector.multi_reduction <maximumf>, %5, %cst [0] : vector<4x16xf32> to vector<16xf32>
    %22 = vector.shape_cast %21 : vector<16xf32> to vector<1x16xf32>
    %23 = vector.broadcast %22 : vector<1x16xf32> to vector<4x16xf32>
    %24 = arith.subf %5, %23 : vector<4x16xf32>
    %25 = math.exp %24 : vector<4x16xf32>
    %cst_6 = arith.constant dense<0.000000e+00> : vector<16xf32>
    %26 = vector.multi_reduction <add>, %25, %cst_6 [0] : vector<4x16xf32> to vector<16xf32>
    %27 = vector.shape_cast %26 : vector<16xf32> to vector<1x16xf32>
    %28 = math.log %27 : vector<1x16xf32>
    %cst_7 = arith.constant 0.000000e+00 : f32
    %29 = vector.broadcast %cst_7 : f32 to vector<4x16xf32>
    %30 = arith.select %20, %24, %29 : vector<4x16xi1>, vector<4x16xf32>
    %cst_8 = arith.constant dense<0.000000e+00> : vector<16xf32>
    %31 = vector.multi_reduction <add>, %30, %cst_8 [0] : vector<4x16xf32> to vector<16xf32>
    %32 = vector.shape_cast %31 : vector<16xf32> to vector<1x16xf32>
    %33 = arith.subf %32, %28 : vector<1x16xf32>
    %34 = math.exp %33 : vector<1x16xf32>
    %c0_i32_9 = arith.constant 0 : i32
    %35 = vector.broadcast %c0_i32_9 : i32 to vector<1x16xi32>
    %36 = arith.cmpi eq, %17, %35 : vector<1x16xi32>
    %cst_10 = arith.constant 5.000000e-01 : f32
    %cst_11 = arith.constant 5.000000e-01 : f32
    %37 = vector.broadcast %cst_10 : f32 to vector<1x16xf32>
    %38 = vector.broadcast %cst_11 : f32 to vector<1x16xf32>
    %39 = arith.select %36, %37, %38 : vector<1x16xi1>, vector<1x16xf32>
    %cst_12 = arith.constant 1.000000e+00 : f32
    %40 = vector.broadcast %cst_12 : f32 to vector<1x16xf32>
    %41 = arith.subf %40, %34 : vector<1x16xf32>
    %42 = arith.mulf %41, %41 : vector<1x16xf32>
    %cst_13 = arith.constant 0.000000e+00 : f32
    %43 = vector.broadcast %cst_13 : f32 to vector<1x16xf32>
    %44 = arith.subf %43, %39 : vector<1x16xf32>
    %45 = arith.mulf %44, %42 : vector<1x16xf32>
    %46 = arith.mulf %45, %33 : vector<1x16xf32>
    %cst_14 = arith.constant 0.000000e+00 : f32
    %47 = vector.broadcast %cst_14 : f32 to vector<1x16xf32>
    %48 = arith.select %15, %46, %47 : vector<1x16xi1>, vector<1x16xf32>
    %c0_15 = arith.constant 0 : index
    %c0_16 = arith.constant 0 : index
    %49 = vector.load %arg6[%c0_15, %c0_16] : memref<1x16xf32, #tpu.memory_space<vmem>>, vector<1x16xf32>
    %50 = arith.addf %49, %48 : vector<1x16xf32>
    %c0_17 = arith.constant 0 : index
    %c0_18 = arith.constant 0 : index
    %51 = vector.load %arg6[%c0_17, %c0_18] : memref<1x16xf32, #tpu.memory_space<vmem>>, vector<1x16xf32>
    tpu.vector_store %arg6[%c0_17, %c0_18], %50 {strides = array<i32>} : memref<1x16xf32, #tpu.memory_space<vmem>>, vector<1x16xf32>,
    %c0_19 = arith.constant 0 : index
    %c0_20 = arith.constant 0 : index
    %52 = vector.load %arg7[%c0_19, %c0_20] : memref<1x16xi32, #tpu.memory_space<vmem>>, vector<1x16xi32>
    %53 = arith.extui %15 : vector<1x16xi1> to vector<1x16xi32>
    %54 = arith.addi %52, %53 : vector<1x16xi32>
    %c0_21 = arith.constant 0 : index
    %c0_22 = arith.constant 0 : index
    %55 = vector.load %arg7[%c0_21, %c0_22] : memref<1x16xi32, #tpu.memory_space<vmem>>, vector<1x16xi32>
    tpu.vector_store %arg7[%c0_21, %c0_22], %54 {strides = array<i32>} : memref<1x16xi32, #tpu.memory_space<vmem>>, vector<1x16xi32>,
    %c0_i32_23 = arith.constant 0 : i32
    %56 = arith.cmpi eq, %arg1, %c0_i32_23 : i32
    %57 = arith.extui %56 : i1 to i32
    %c0_i32_24 = arith.constant 0 : i32
    %58 = arith.cmpi ne, %57, %c0_i32_24 : i32
    scf.if %58 {
      %c0_25 = arith.constant 0 : index
      %c0_26 = arith.constant 0 : index
      %59 = vector.load %arg6[%c0_25, %c0_26] : memref<1x16xf32, #tpu.memory_space<vmem>>, vector<1x16xf32>
      %60 = vector.shape_cast %59 : vector<1x16xf32> to vector<1x1x16xf32>
      %cst_27 = arith.constant dense<0.000000e+00> : vector<1xf32>
      %61 = vector.multi_reduction <add>, %60, %cst_27 [1, 2] : vector<1x1x16xf32> to vector<1xf32>
      %62 = vector.shape_cast %61 : vector<1xf32> to vector<1x1x1xf32>
      %63 = vector.extract %62[0, 0, 0] : f32 from vector<1x1x1xf32>
      %64 = vector.broadcast %63 : f32 to vector<1x1x128xf32>
      %c0_28 = arith.constant 0 : index
      %c0_29 = arith.constant 0 : index
      %c0_30 = arith.constant 0 : index
      %65 = vector.load %arg4[%c0_28, %c0_29, %c0_30] : memref<1x1x128xf32, #tpu.memory_space<vmem>>, vector<1x1x128xf32>
      tpu.vector_store %arg4[%c0_28, %c0_29, %c0_30], %64 {strides = array<i32>} : memref<1x1x128xf32, #tpu.memory_space<vmem>>, vector<1x1x128xf32>,
      %c0_31 = arith.constant 0 : index
      %c0_32 = arith.constant 0 : index
      %66 = vector.load %arg7[%c0_31, %c0_32] : memref<1x16xi32, #tpu.memory_space<vmem>>, vector<1x16xi32>
      %67 = vector.shape_cast %66 : vector<1x16xi32> to vector<1x1x16xi32>
      %cst_33 = arith.constant dense<0> : vector<1xi32>
      %68 = vector.multi_reduction <add>, %67, %cst_33 [1, 2] : vector<1x1x16xi32> to vector<1xi32>
      %69 = vector.shape_cast %68 : vector<1xi32> to vector<1x1x1xi32>
      %70 = vector.extract %69[0, 0, 0] : i32 from vector<1x1x1xi32>
      %71 = vector.broadcast %70 : i32 to vector<1x1x128xi32>
      %c0_34 = arith.constant 0 : index
      %c0_35 = arith.constant 0 : index
      %c0_36 = arith.constant 0 : index
      %72 = vector.load %arg5[%c0_34, %c0_35, %c0_36] : memref<1x1x128xi32, #tpu.memory_space<vmem>>, vector<1x1x128xi32>
      tpu.vector_store %arg5[%c0_34, %c0_35, %c0_36], %71 {strides = array<i32>} : memref<1x1x128xi32, #tpu.memory_space<vmem>>, vector<1x1x128xi32>,
    } else {
    }
    return
  }
  func.func @transform_0(%arg0: i32, %arg1: i32) -> (i32, i32) {
    %c1_i32 = arith.constant 1 : i32
    %0 = arith.muli %arg0, %c1_i32 : i32
    %1 = arith.addi %0, %arg1 : i32
    %c0_i32 = arith.constant 0 : i32
    %2 = arith.minsi %1, %c0_i32 : i32
    %c0_i32_0 = arith.constant 0 : i32
    %c0_i32_1 = arith.constant 0 : i32
    return %c0_i32_0, %2 : i32, i32
  }
  func.func @transform_1(%arg0: i32, %arg1: i32) -> (i32, i32) {
    %c1_i32 = arith.constant 1 : i32
    %0 = arith.muli %arg0, %c1_i32 : i32
    %1 = arith.addi %0, %arg1 : i32
    %c0_i32 = arith.constant 0 : i32
    %2 = arith.minsi %1, %c0_i32 : i32
    %c0_i32_0 = arith.constant 0 : i32
    %c0_i32_1 = arith.constant 0 : i32
    return %c0_i32_0, %2 : i32, i32
  }
  func.func @transform_2(%arg0: i32, %arg1: i32) -> (i32, i32, i32) {
    %c0_i32 = arith.constant 0 : i32
    %c0_i32_0 = arith.constant 0 : i32
    %c0_i32_1 = arith.constant 0 : i32
    return %arg0, %c0_i32, %c0_i32_0 : i32, i32, i32
  }
  func.func @transform_3(%arg0: i32, %arg1: i32) -> (i32, i32, i32) {
    %c0_i32 = arith.constant 0 : i32
    %c0_i32_0 = arith.constant 0 : i32
    %c0_i32_1 = arith.constant 0 : i32
    return %arg0, %c0_i32, %c0_i32_0 : i32, i32, i32
  }
}

</mosaic_0001>

<bundles_post_ra>
// kernel: tpu_custom_call.1
= control target key start
LH: loop header
LB: loop body
LE: loop exit
PB: predicated region body
PF: predicated region fallthrough
CT: control target
= control target key end

     0   :  { %9 = vsyncpa [#allocation5], 0  ;;  %s380_s0 = inlined_call_operand.hbm [shape: f32[4,16], index: 0, kind: input, shape index: {}]   ;;  %s381_s1 = inlined_call_operand.vmem [shape: s32[1,16], index: 1, kind: input, shape index: {}]   ;;  %s382_s2 = inlined_call_operand.hbm [shape: f32[1,1,128], index: 2, kind: output, shape index: {0}]   ;;  %s383_s3 = inlined_call_operand.hbm [shape: s32[1,1,128], index: 3, kind: output, shape index: {1}]  }
   0x1   :  { %10 = vsyncpa [#allocation6], 0 }
   0x2   :  { %11 = vsyncpa [#allocation9], 0  ;;  %s289_s12 = smov [#allocation4]   ;;  %s217_s16 = scalar_lea.hbm %s380_s0, 64 }
   0x3   :  { %s23_s13 = sshll.u32 %s289_s12, 4  ;;  %p218_p0 = scmp.ne.s32.totalorder %s380_s0, %s217_s16  ;;  %s24_s13 = int_to_ptr.vmem [resolvable:$true] %s23_s13 }
   0x4   :  { %p221_p1 = scmp.lt.u32.totalorder %s217_s16, %s380_s0 }
   0x6   :  { %p223_p2 = pnand %p221_p1, %p218_p0 }
   0x8   :  { %226 = shalt.err (!%p223_p2)
}
   0x9   :  { %s227_s21 = scalar_lea.vmem %s24_s13, 64  ;;  %p232_p4 = scmp.lt.s32.totalorder %s24_s13, %s24_s13 }
   0xa   :  { %p228_p3 = scmp.ne.s32.totalorder %s24_s13, %s227_s21  ;;  %p233_p5 = scmp.lt.s32.totalorder %s227_s21, %s227_s21 }
   0xc   :  { %p234_p6 = por %p233_p5, %p232_p4 }
   0xe   :  { %p235_p7 = pnand %p234_p6, %p228_p3 }
  0x10   :  { %238 = shalt.err (!%p235_p7)
}
  0x11   :  { %26 = dma.hbm_to_vmem [thread:$0]  %s380_s0, 64, %s24_s13, [#allocation5]  }
  0x12   :  { %283 = dma.done.wait [#allocation5], 64  }
  0x13   :  { %284 = vsyncadd [#allocation5], 4294967232  ;;  %vm63_vm0 = vcmask 122880   ;;  %v70_v0 = vlaneseq  ;;  %v290_v1 = vmov 0   ;;  %v291_v2 = vmov 0.0   ;;  %s292_s0 = smov [#allocation7]  }
  0x14   :  { %65 = vst.msk [vmem:[#allocation3] sm:$0x1] %vm63_vm0, %v290_v1  ;;  %64 = vst.msk [vmem:[#allocation2] sm:$0x1] %vm63_vm0, %v291_v2  ;;  %vm85_vm1 = vcmask 125952   ;;  %s293_s26 = smov [#allocation8]  }
  0x15   :  { %v71_v3 = vand.u32 127, %v70_v0  ;;  %v67_v4 = vld [vmem:[#allocation4] sm:$0xf]  ;;  %v68_v5 = vld [vmem:[%s381_s1] sm:$0x1]  ;;  %v79_v15 = vshrl.u32 %v70_v0, 7 }
  0x16   :  { %vm74_vm3 = vcmp.ne.s32.totalorder %v68_v5, 4294967196  ;;  %v86_v6 = vsel %vm85_vm1, %v67_v4, -inf  ;;  %s174_s1 = sshll.u32 %s292_s0, 4  ;;  %s184_s27 = sshll.u32 %s293_s26, 4  ;;  %s175_s1 = int_to_ptr.vmem [resolvable:$true] %s174_s1  ;;  %s348_s27 = int_to_ptr.vmem [resolvable:$true] %s184_s27 }
  0x17   :  { %vm75_vm2 = vcmp.lt.s32.totalorder %v71_v3, 16  ;;  %v87_v9 = vrot.slane %v86_v6, 4  ;;  %v82_v19 = vsub.s32 0, %v79_v15  ;;  %s239_s30 = scalar_lea.vmem %s175_s1, 16  ;;  %s243_s4 = scalar_lea.vmem %s175_s1, 32 }
  0x18   :  { %vm332_vm4 = vmand %vm74_vm3, %vm75_vm2  ;;  %p240_p8 = scmp.ne.s32.totalorder %s175_s1, %s239_s30  ;;  %p244_p9 = scmp.lt.s32.totalorder %s175_s1, %s175_s1 }
  0x19   :  { %v126_v10 = vsel %vm332_vm4, 1, %v290_v1  ;;  %v88_v11 = vmax.f32 %v86_v6, %v87_v9  ;;  %v77_v22 = vsel %vm332_vm4, %v68_v5, 0  ;;  %p245_p10 = scmp.lt.s32.totalorder %s243_s4, %s239_s30 }
  0x1a   :  { %v83_v27 = vrot.slane %v77_v22, %v82_v19 }
  0x1b   :  { %v125_v7 = vld [vmem:[#allocation3] sm:$0x1]  ;;  %v89_v13 = vrot.slane %v88_v11, 2  ;;  %v121_v54 = vld [vmem:[#allocation2] sm:$0x1]  ;;  %p246_p11 = por %p245_p10, %p244_p9 }
  0x1c   :  { %v127_v12 = vadd.s32 %v126_v10, %v125_v7  ;;  %vm84_vm5 = vcmp.eq.s32.totalorder %v79_v15, %v83_v27 }
  0x1d   :  { %v90_v14 = vmax.f32 %v88_v11, %v89_v13  ;;  %p247_p12 = pnand %p246_p11, %p240_p8 }
  0x1e   :  { %128 = vst.msk [vmem:[#allocation3] sm:$0x1] %vm63_vm0, %v127_v12 }
  0x1f   :  { %v91_v16 = vrot.slane %v90_v14, 1 }
  0x21   :  { %v92_v17 = vmax.f32 %v90_v14, %v91_v16 }
  0x23   :  { %v93_v20 = vsub.f32 %v67_v4, %v92_v17 }
  0x25   :  { %v145_v18 = vld [vmem:[#allocation3] sm:$0x1]  ;;  %v94_v25 = vmul.f32 1.442695, %v93_v20  ;;  %v105_v29 = vsel %vm84_vm5, %v93_v20, 0.0 }
  0x26   :  { %v146_v21 = vsel %vm63_vm0, %v145_v18, 0  ;;  %v106_v31 = vsel %vm85_vm1, %v105_v29, 0.0 }
  0x27   :  { %v148_v23 = vshrl.u32 %v146_v21, 16  ;;  %v147_v24 = vand.u32 65535, %v146_v21  ;;  %211 = vpow2.f32 %v94_v25  ;;  %v107_v34 = vrot.slane %v106_v31, 4 }
  0x29   :  { %v150_v26 = vcvt.s32.f32 %v148_v23  ;;  %v149_v28 = vcvt.s32.f32 %v147_v24  ;;  %v108_v37 = vadd.f32 %v107_v34, %v106_v31 }
  0x2b   :  { %153 = vadd.xlane.f32.xlu0 %v150_v26  ;;  %v109_v40 = vrot.slane %v108_v37, 2 }
  0x2d   :  { %v110_v42 = vadd.f32 %v109_v40, %v108_v37 }
  0x2f   :  { %151 = vadd.xlane.f32.xlu0 %v149_v28  ;;  %v111_v43 = vrot.slane %v110_v42, 1 }
  0x31   :  { %v212_v30 = vpop.eup %211  ;;  %v112_v44 = vadd.f32 %v111_v43, %v110_v42 }
  0x32   :  { %v96_v32 = vsel %vm85_vm1, %v212_v30, 0.0 }
  0x33   :  { %v97_v33 = vrot.slane %v96_v32, 4 }
  0x35   :  { %v98_v35 = vadd.f32 %v97_v33, %v96_v32 }
  0x37   :  { %v99_v36 = vrot.slane %v98_v35, 2 }
  0x39   :  { %v100_v38 = vadd.f32 %v99_v36, %v98_v35 }
  0x3b   :  { %v101_v39 = vrot.slane %v100_v38, 1 }
  0x3d   :  { %v102_v41 = vadd.f32 %v101_v39, %v100_v38 }
  0x3f   :  { %213 = vlog2.f32 %v102_v41 }
  0x49   :  { %v214_v45 = vpop.eup %213 }
  0x4a   :  { %v104_v46 = vmul.f32 0.6931472, %v214_v45 }
  0x4c   :  { %v113_v47 = vsub.f32 %v112_v44, %v104_v46 }
  0x4e   :  { %v114_v48 = vmul.f32 1.442695, %v113_v47 }
  0x50   :  { %215 = vpow2.f32 %v114_v48 }
  0x5a   :  { %v216_v49 = vpop.eup %215 }
  0x5b   :  { %v116_v50 = vsub.f32 1.0, %v216_v49 }
  0x5d   :  { %v117_v51 = vmul.f32 %v116_v50, %v116_v50 }
  0x5f   :  { %v118_v52 = vmul.f32 -0.5, %v117_v51 }
  0x61   :  { %v119_v53 = vmul.f32 %v118_v52, %v113_v47 }
  0x63   :  { %v120_v55 = vsel %vm332_vm4, %v119_v53, 0.0 }
  0x64   :  { %v122_v56 = vadd.f32 %v121_v54, %v120_v55 }
  0x66   :  { %124 = vst.msk [vmem:[#allocation2] sm:$0x1] %vm63_vm0, %v122_v56 }
  0x6d   :  { %v132_v57 = vld [vmem:[#allocation2] sm:$0x1] }
  0x6e   :  { %v133_v58 = vsel %vm63_vm0, %v132_v57, 0.0 }
  0x6f   :  { %134 = vadd.xlane.f32.xlu1 %v133_v58 }
  0xb8   :  { %v154_v59 = vpop.xlane.xlu0 %153 }
  0xb9   :  { %v156_v60 = vcvt.f32.s32 %v154_v59 }
  0xbb   :  { %v157_v62 = vshll.u32 %v156_v60, 16 }
  0xbc   :  { %v152_v61 = vpop.xlane.xlu0 %151 }
  0xbd   :  { %v155_v63 = vcvt.f32.s32 %v152_v61 }
  0xbf   :  { %v158_v0 = vadd.s32 %v157_v62, %v155_v63 }
  0xc1   :  { %v159_v1 = vrot.slane %v158_v0, 4 }
  0xc3   :  { %v160_v2 = vadd.s32 %v159_v1, %v158_v0 }
  0xc5   :  { %v161_v4 = vrot.slane %v160_v2, 2 }
  0xc7   :  { %v162_v7 = vadd.s32 %v161_v4, %v160_v2 }
  0xc9   :  { %v163_v10 = vrot.slane %v162_v7, 1 }
  0xcb   :  { %v164_v13 = vadd.s32 %v163_v10, %v162_v7 }
  0xfc   :  { %v135_v3 = vpop.xlane.xlu1 %134 }
  0xfd   :  { %v136_v5 = vrot.slane %v135_v3, 4 }
  0xff   :  { %v137_v6 = vadd.f32 %v136_v5, %v135_v3 }
 0x101   :  { %v138_v8 = vrot.slane %v137_v6, 2 }
 0x103   :  { %v139_v9 = vadd.f32 %v138_v8, %v137_v6 }
 0x105   :  { %v140_v11 = vrot.slane %v139_v9, 1 }
 0x107   :  { %v141_v12 = vadd.f32 %v140_v11, %v139_v9 }
 0x109   :  { %202 = vpush %v141_v12 }
 0x10a   :  { %204 = vpush %v164_v13 }
 0x13a   :  { %s203_s28 = spop %202 }
 0x13b   :  { %v143_v14 = vstv %s203_s28  ;;  %s205_s29 = spop %204 }
 0x13c   :  { %144 = vst [vmem:[#allocation7] sm:$0x1] %v143_v14  ;;  %v166_v15 = vstv %s205_s29 }
 0x13d   :  { %167 = vst [vmem:[#allocation8] sm:$0x1] %v166_v15 }
 0x13e   :  { %250 = shalt.err (!%p247_p12)
}
 0x13f   :  { %s251_s7 = scalar_lea.hbm %s382_s2, 16 }
 0x140   :  { %p252_p13 = scmp.ne.s32.totalorder %s382_s2, %s251_s7  ;;  %p255_p0 = scmp.lt.u32.totalorder %s251_s7, %s382_s2 }
 0x142   :  { %p257_p1 = pnand %p255_p0, %p252_p13 }
 0x144   :  { %260 = shalt.err (!%p257_p1)
}
 0x145   :  { %177 = dma.vmem_to_hbm [thread:$0]  %s175_s1, 16, %s382_s2, [#allocation6]  }
 0x146   :  { %s261_s14 = scalar_lea.vmem %s348_s27, 16  ;;  %s265_s15 = scalar_lea.vmem %s348_s27, 32 }
 0x147   :  { %p262_p2 = scmp.ne.s32.totalorder %s348_s27, %s261_s14  ;;  %p266_p3 = scmp.lt.s32.totalorder %s348_s27, %s348_s27 }
 0x148   :  { %p267_p4 = scmp.lt.s32.totalorder %s265_s15, %s261_s14 }
 0x14a   :  { %p268_p5 = por %p267_p4, %p266_p3 }
 0x14c   :  { %p269_p6 = pnand %p268_p5, %p262_p2 }
 0x14e   :  { %272 = shalt.err (!%p269_p6)
}
 0x14f   :  { %s273_s18 = scalar_lea.hbm %s383_s3, 16 }
 0x150   :  { %p274_p7 = scmp.ne.s32.totalorder %s383_s3, %s273_s18  ;;  %p277_p8 = scmp.lt.u32.totalorder %s273_s18, %s383_s3 }
 0x152   :  { %p279_p9 = pnand %p277_p8, %p274_p7 }
 0x154   :  { %282 = shalt.err (!%p279_p9)
}
 0x155   :  { %187 = dma.vmem_to_hbm [thread:$0]  %s348_s27, 16, %s383_s3, [#allocation9]  }
 0x156   :  { %285 = dma.done.wait [#allocation6], 16  }
 0x157   :  { %286 = vsyncadd [#allocation6], 4294967280 }
 0x158   :  { %287 = dma.done.wait [#allocation9], 16  }
 0x159   :  { %288 = vsyncadd [#allocation9], 4294967280 }
 0x15a   :  { %194 = vsyncpa [#allocation5], 1 }
 0x15b   :  { %195 = vsyncpa [#allocation6], 1 }
 0x15c   :  { %196 = vsyncpa [#allocation9], 1 }

</bundles_post_ra>
